<compile_context>
chip_gen: v6e
topology: v6e:2x2x1
jax: 0.10.0
libtpu: 0.0.40
codegen_flags: <defaults>
</compile_context>

<pallas_src>
import functools

import jax
import jax.numpy as jnp
import numpy as np
from jax.experimental import pallas as pl
from jax.experimental.pallas import tpu as pltpu

_EPS = 1e-5
# Above the v5e 16 MiB / v6e 32 MiB scoped defaults, below v7x's 64 MiB physical.
_VMEM_LIMIT = 48 * 1024 * 1024


# ----------------------------------------------------------------------------
# In-kernel helpers
# ----------------------------------------------------------------------------
def _conv_taps_matmul(get_tap, w_ref, *, k, m_rows, c, fuse):
    """sum_t (M, C)@(C, C_out).  One deep fused matmul when C is lane-aligned,
    else k per-tap (lane-aligned) matmuls accumulated in f32."""
    if fuse:
        tap = jnp.concatenate(
            [get_tap(t).reshape(m_rows, c) for t in range(k)], axis=-1)
        w2d = w_ref[...].reshape(k * c, w_ref.shape[-1])
        return jnp.dot(tap, w2d, preferred_element_type=jnp.float32)
    acc = None
    for t in range(k):
        part = jnp.dot(get_tap(t).reshape(m_rows, c), w_ref[t],
                       preferred_element_type=jnp.float32)
        acc = part if acc is None else acc + part
    return acc


def _accumulate_stats(acc2d, sum_ref, sq_ref, *, l_out, bt, steps,
                      n_valid, need_mask):
    """Accumulate per-channel sum / sum-of-squares, excluding batch padding."""
    if need_mask:
        tile = pl.program_id(0) * steps + pl.program_id(1)
        row = jax.lax.broadcasted_iota(jnp.int32, (acc2d.shape[0], 1), 0)
        # valid samples of a tile are a contiguous prefix -> simple row limit
        lim = jnp.clip((n_valid - tile * bt) * l_out, 0, bt * l_out)
        acc2d = jnp.where(row < lim, acc2d, 0.0)
    sum_ref[...] += jnp.sum(acc2d, axis=0, keepdims=True).reshape(sum_ref.shape)
    sq_ref[...] += jnp.sum(acc2d * acc2d, axis=0,
                           keepdims=True).reshape(sq_ref.shape)


# ----------------------------------------------------------------------------
# Kernel A1: conv1 (stride 1) with in-kernel zero padding + BN1 statistics
# ----------------------------------------------------------------------------
def _conv1_stats_pad_kernel(x_ref, w1_ref, y1_ref, sum_ref, sq_ref, xpad_ref, *,
                            k, pad, l_in, bt, steps, n_valid, fuse, need_mask):
    c_in = x_ref.shape[-1]
    c_out = y1_ref.shape[-1]
    l_out = l_in  # stride 1, "same" padding

    @pl.when(pl.program_id(1) == 0)
    def _init():
        sum_ref[...] = jnp.zeros_like(sum_ref)
        sq_ref[...] = jnp.zeros_like(sq_ref)
        if pad:  # zero only the halo rows, once per chunk sweep
            zeros = jnp.zeros((bt, pad, c_in), xpad_ref.dtype)
            xpad_ref[:, 0:pad, :] = zeros
            xpad_ref[:, pad + l_in:pad + l_in + pad, :] = zeros

    # interior is fully overwritten every step (cast f32 -> bf16 here)
    xpad_ref[:, pad:pad + l_in, :] = x_ref[...].astype(xpad_ref.dtype)

    m_rows = bt * l_out
    acc = _conv_taps_matmul(lambda t: xpad_ref[:, t:t + l_out, :], w1_ref,
                            k=k, m_rows=m_rows, c=c_in, fuse=fuse)
    _accumulate_stats(acc, sum_ref, sq_ref, l_out=l_out, bt=bt, steps=steps,
                      n_valid=n_valid, need_mask=need_mask)
    y1_ref[...] = acc.reshape(bt, l_out, c_out).astype(y1_ref.dtype)


# ----------------------------------------------------------------------------
# Kernel A2: conv1 (stride 2) on the padded/deinterleaved slab + BN1 statistics
# ----------------------------------------------------------------------------
def _conv1_stats_slab_kernel(x_ref, w1_ref, y1_ref, sum_ref, sq_ref, *,
                             k, stride, l_out, bt, steps, n_valid, fuse,
                             need_mask):
    c_in = x_ref.shape[-1]
    c_out = y1_ref.shape[-1]

    @pl.when(pl.program_id(1) == 0)
    def _init():
        sum_ref[...] = jnp.zeros_like(sum_ref)
        sq_ref[...] = jnp.zeros_like(sq_ref)

    m_rows = bt * l_out

    def tap(t):  # unit-stride slice of one parity plane of the slab
        return x_ref[:, t % stride, (t // stride):(t // stride) + l_out, :]

    acc = _conv_taps_matmul(tap, w1_ref, k=k, m_rows=m_rows, c=c_in, fuse=fuse)
    _accumulate_stats(acc, sum_ref, sq_ref, l_out=l_out, bt=bt, steps=steps,
                      n_valid=n_valid, need_mask=need_mask)
    y1_ref[...] = acc.reshape(bt, l_out, c_out).astype(y1_ref.dtype)


# ----------------------------------------------------------------------------
# Kernel B: BN1 (folded scale/shift) + ReLU + conv2 + BN2 statistics
# ----------------------------------------------------------------------------
def _bn1_conv2_stats_kernel(y1_ref, sc1_ref, sh1_ref, w2_ref,
                            y2_ref, sum_ref, sq_ref, hpad_ref, *,
                            k, pad, l_out, bt, steps, n_valid, fuse, need_mask):
    c_out = y2_ref.shape[-1]

    @pl.when(pl.program_id(1) == 0)
    def _init():
        sum_ref[...] = jnp.zeros_like(sum_ref)
        sq_ref[...] = jnp.zeros_like(sq_ref)
        if pad:  # zero only the halo rows, once per chunk sweep
            zeros = jnp.zeros((bt, pad, c_out), hpad_ref.dtype)
            hpad_ref[:, 0:pad, :] = zeros
            hpad_ref[:, pad + l_out:pad + l_out + pad, :] = zeros

    h = jnp.maximum(
        y1_ref[...].astype(jnp.float32) * sc1_ref[...] + sh1_ref[...], 0.0)
    hpad_ref[:, pad:pad + l_out, :] = h.astype(hpad_ref.dtype)  # bf16 scratch

    m_rows = bt * l_out
    acc = _conv_taps_matmul(lambda t: hpad_ref[:, t:t + l_out, :], w2_ref,
                            k=k, m_rows=m_rows, c=c_out, fuse=fuse)
    _accumulate_stats(acc, sum_ref, sq_ref, l_out=l_out, bt=bt, steps=steps,
                      n_valid=n_valid, need_mask=need_mask)
    y2_ref[...] = acc.reshape(bt, l_out, c_out).astype(y2_ref.dtype)


# ----------------------------------------------------------------------------
# Kernel C: BN2 + ReLU + shortcut (identity / 1x1 stride-2 conv) + residual add
# ----------------------------------------------------------------------------
def _bn2_residual_kernel(y2_ref, sc2_ref, sh2_ref, x_ref, *rest,
                         proj, start, l_out, bt):
    if proj:
        ws_ref, bs_ref, out_ref = rest
    else:
        (out_ref,) = rest

    f = jnp.maximum(
        y2_ref[...].astype(jnp.float32) * sc2_ref[...] + sh2_ref[...], 0.0)

    if proj:
        # single parity plane of the slab was DMA'd; contiguous center-tap slice
        tap = x_ref[:, 0, start:start + l_out, :]
        m_rows = bt * l_out
        s = jnp.dot(tap.reshape(m_rows, tap.shape[-1]), ws_ref[...],
                    preferred_element_type=jnp.float32) + bs_ref[...]
        s = s.reshape(bt, l_out, s.shape[-1])
    else:
        s = x_ref[...].astype(jnp.float32)  # identity shortcut, exact f32

    out_ref[...] = (f + s).astype(out_ref.dtype)


# ----------------------------------------------------------------------------
# Wrappers
# ----------------------------------------------------------------------------
def _bn_scale_shift(sum_c, sumsq_c, gamma, beta, m_total):
    c = gamma.shape[0]
    total = jnp.sum(sum_c.reshape(-1, c), axis=0)
    totsq = jnp.sum(sumsq_c.reshape(-1, c), axis=0)
    mean = total / m_total
    # TODO(synk): switch to shifted/Welford moments if tolerance tightens.
    var = jnp.maximum(totsq / m_total - mean * mean, 0.0)
    scale = gamma * jax.lax.rsqrt(var + _EPS)
    shift = beta - mean * scale
    return scale.reshape(1, c), shift.reshape(1, c)


def residual_cell_nlc(x_nlc, params, kernel_size, *, batch_tile=8,
                      out_dtype=jnp.float32):
    """Channels-last entry point: x (N, L, C_in) -> (N, L_out, C_out)."""
    n, l, c_in = x_nlc.shape
    c_out = params["w1"].shape[0]
    k = kernel_size
    assert k % 2 == 1, "odd kernel_size assumed (module default geometry)"
    proj = (c_in != c_out)
    stride = 2 if proj else 1
    pad = (k - 1) // 2
    l_out = (l + 2 * pad - k) // stride + 1
    m_total = n * l_out

    # ---- batch tiling / megacore chunking ------------------------------------
    bt = max(1, min(batch_tile, n))
    n_tiles = int(pl.cdiv(n, bt))
    chunks = 2 if n_tiles >= 2 else 1   # leading 'parallel' axis -> v7x 2 TCs
    n_tiles = int(pl.cdiv(n_tiles, chunks)) * chunks
    steps = n_tiles // chunks
    n_pad = n_tiles * bt
    need_mask = (n_pad != n)
    if need_mask:
        x_nlc = jnp.pad(x_nlc, ((0, n_pad - n), (0, 0), (0, 0)))

    # lane-aligned channels -> one deep fused-tap matmul; otherwise k per-tap
    # lane-aligned matmuls (avoids lane-misaligned concatenate relayouts).
    fuse1 = (c_in % 128 == 0)
    fuse2 = (c_out % 128 == 0)

    # conv weights as (k, C_in, C_out): per-tap slices are leading-axis reads
    w1t = jnp.transpose(params["w1"], (2, 1, 0)).astype(jnp.bfloat16)
    w2t = jnp.transpose(params["w2"], (2, 1, 0)).astype(jnp.bfloat16)

    common = dict(bt=bt, steps=steps, n_valid=n, need_mask=need_mask)
    cparams = pltpu.CompilerParams(
        dimension_semantics=("parallel", "arbitrary"),
        vmem_limit_bytes=_VMEM_LIMIT)

    y_spec = pl.BlockSpec((bt, l_out, c_out), lambda c, i: (c * steps + i, 0, 0))
    stats_out_spec = (pl.BlockSpec((1, 1, c_out), lambda c, i: (c, 0, 0)),
                      pl.BlockSpec((1, 1, c_out), lambda c, i: (c, 0, 0)))
    stats_out_shape = (jax.ShapeDtypeStruct((chunks, 1, c_out), jnp.float32),
                       jax.ShapeDtypeStruct((chunks, 1, c_out), jnp.float32))
    w1_spec = pl.BlockSpec((k, c_in, c_out), lambda c, i: (0, 0, 0))

    # ---- pass 1: conv1 + BN1 statistics ---------------------------------------
    x_slab = None
    lh = None
    if stride == 1:
        # No wrapper-side preprocessing: raw f32 x, zero-padded in-kernel.
        y1, s1, q1 = pl.pallas_call(
            functools.partial(_conv1_stats_pad_kernel, k=k, pad=pad, l_in=l,
                              fuse=fuse1, **common),
            grid=(chunks, steps),
            in_specs=[pl.BlockSpec((bt, l, c_in),
                                   lambda c, i: (c * steps + i, 0, 0)),
                      w1_spec],
            out_specs=(y_spec,) + stats_out_spec,
            out_shape=(jax.ShapeDtypeStruct((n_pad, l_out, c_out), jnp.bfloat16),)
                      + stats_out_shape,
            scratch_shapes=[pltpu.VMEM((bt, l + 2 * pad, c_in), jnp.bfloat16)],
            compiler_params=cparams,
        )(x_nlc, w1t)
    else:
        # Zero-padded, stride-deinterleaved slab (1x data, bf16).
        # TODO(synk): fold this last wrapper-side HBM copy into the kernel via
        # strided ref reads (pl.ds(..., stride=2)) once validated everywhere.
        lh = (k - 1) // stride + l_out
        total = stride * lh
        x_pad = jnp.pad(x_nlc, ((0, 0), (pad, total - l - pad), (0, 0)))
        x_slab = jnp.transpose(x_pad.reshape(n_pad, lh, stride, c_in),
                               (0, 2, 1, 3)).astype(jnp.bfloat16)
        y1, s1, q1 = pl.pallas_call(
            functools.partial(_conv1_stats_slab_kernel, k=k, stride=stride,
                              l_out=l_out, fuse=fuse1, **common),
            grid=(chunks, steps),
            in_specs=[pl.BlockSpec((bt, stride, lh, c_in),
                                   lambda c, i: (c * steps + i, 0, 0, 0)),
                      w1_spec],
            out_specs=(y_spec,) + stats_out_spec,
            out_shape=(jax.ShapeDtypeStruct((n_pad, l_out, c_out), jnp.bfloat16),)
                      + stats_out_shape,
            compiler_params=cparams,
        )(x_slab, w1t)
    sc1, sh1 = _bn_scale_shift(s1, q1, params["g1"], params["be1"], m_total)

    # ---- pass 2: BN1+ReLU, conv2 + BN2 statistics -----------------------------
    y2, s2, q2 = pl.pallas_call(
        functools.partial(_bn1_conv2_stats_kernel, k=k, pad=pad, l_out=l_out,
                          fuse=fuse2, **common),
        grid=(chunks, steps),
        in_specs=[y_spec,
                  pl.BlockSpec((1, c_out), lambda c, i: (0, 0)),
                  pl.BlockSpec((1, c_out), lambda c, i: (0, 0)),
                  pl.BlockSpec((k, c_out, c_out), lambda c, i: (0, 0, 0))],
        out_specs=(y_spec,) + stats_out_spec,
        out_shape=(jax.ShapeDtypeStruct((n_pad, l_out, c_out), jnp.bfloat16),)
                  + stats_out_shape,
        scratch_shapes=[pltpu.VMEM((bt, l_out + 2 * pad, c_out), jnp.bfloat16)],
        compiler_params=cparams,
    )(y1, sc1, sh1, w2t)
    sc2, sh2 = _bn_scale_shift(s2, q2, params["g2"], params["be2"], m_total)

    # ---- pass 3: BN2+ReLU + shortcut + residual add ---------------------------
    y_spec3 = pl.BlockSpec((bt, l_out, c_out), lambda i: (i, 0, 0))
    inputs = [y2, sc2, sh2]
    in_specs3 = [y_spec3,
                 pl.BlockSpec((1, c_out), lambda i: (0, 0)),
                 pl.BlockSpec((1, c_out), lambda i: (0, 0))]
    if proj:
        parity = pad % stride
        start = pad // stride
        inputs.append(x_slab)
        # only the parity plane the shortcut reads gets DMA'd
        in_specs3.append(pl.BlockSpec((bt, 1, lh, c_in),
                                      lambda i: (i, parity, 0, 0)))
        inputs += [params["ws"][:, :, 0].T.astype(jnp.bfloat16),
                   params["bs"].reshape(1, c_out).astype(jnp.float32)]
        in_specs3 += [pl.BlockSpec((c_in, c_out), lambda i: (0, 0)),
                      pl.BlockSpec((1, c_out), lambda i: (0, 0))]
    else:
        start = 0
        inputs.append(x_nlc)  # identity shortcut reads raw x
        in_specs3.append(pl.BlockSpec((bt, l, c_in), lambda i: (i, 0, 0)))

    out = pl.pallas_call(
        functools.partial(_bn2_residual_kernel, proj=proj, start=start,
                          l_out=l_out, bt=bt),
        grid=(n_tiles,),
        in_specs=in_specs3,
        out_specs=y_spec3,
        # out_dtype=bf16 halves the final writeback when stacking cells
        out_shape=jax.ShapeDtypeStruct((n_pad, l_out, c_out), out_dtype),
        compiler_params=pltpu.CompilerParams(
            dimension_semantics=("parallel",),
            vmem_limit_bytes=_VMEM_LIMIT),
    )(*inputs)
    return out[:n] if n_pad != n else out


def residual_cell(x, params, kernel_size, *, batch_tile=8,
                  out_dtype=jnp.float32):
    """PyTorch-layout entry point: x (N, C_in, L) -> (N, C_out, L_out)."""
    # TODO(synk): in the full CSV encoder keep activations channels-last (NLC)
    # across stacked cells so these transposes happen once per model.
    out_nlc = residual_cell_nlc(jnp.transpose(x, (0, 2, 1)), params, kernel_size,
                                batch_tile=batch_tile, out_dtype=out_dtype)
    return jnp.transpose(out_nlc, (0, 2, 1))


# ----------------------------------------------------------------------------
# Deterministic parameter init (shapes from ResidualCell.__init__)
# ----------------------------------------------------------------------------
def init_params(key, c_in, c_out, k):
    keys = jax.random.split(key, 6)
    p = {
        "w1": 0.1 * jax.random.normal(keys[0], (c_out, c_in, k), jnp.float32),
        "b1": 0.1 * jax.random.normal(keys[1], (c_out,), jnp.float32),
        "g1": jnp.ones((c_out,), jnp.float32),
        "be1": jnp.zeros((c_out,), jnp.float32),
        "w2": 0.1 * jax.random.normal(keys[2], (c_out, c_out, k), jnp.float32),
        "b2": 0.1 * jax.random.normal(keys[3], (c_out,), jnp.float32),
        "g2": jnp.ones((c_out,), jnp.float32),
        "be2": jnp.zeros((c_out,), jnp.float32),
    }
    if c_in != c_out:
        p["ws"] = 0.1 * jax.random.normal(keys[4], (c_out, c_in, 1), jnp.float32)
        p["bs"] = 0.1 * jax.random.normal(keys[5], (c_out,), jnp.float32)
    return p


# ----------------------------------------------------------------------------
# Pure-JAX f32 reference (lax.conv, WITH conv biases) for cross-checking
# ----------------------------------------------------------------------------
def _conv1d_ref(x, w, b, stride, padding):
    out = jax.lax.conv_general_dilated(
        x, w, window_strides=(stride,), padding=[(padding, padding)],
        dimension_numbers=("NCH", "OIH", "NCH"),
        precision=jax.lax.Precision.HIGHEST)
    return out + b[None, :, None]


def _bn_train_ref(x, gamma, beta, eps=_EPS):
    mean = jnp.mean(x, axis=(0, 2), keepdims=True)
    var = jnp.mean((x - mean) ** 2, axis=(0, 2), keepdims=True)
    return (x - mean) * jax.lax.rsqrt(var + eps) * gamma[None, :, None] \
        + beta[None, :, None]


def residual_cell_ref(x, params, kernel_size):
    c_in = x.shape[1]
    c_out = params["w1"].shape[0]
    proj = (c_in != c_out)
    stride = 2 if proj else 1
    pad = (kernel_size - 1) // 2
    h = _conv1d_ref(x, params["w1"], params["b1"], stride, pad)
    h = jax.nn.relu(_bn_train_ref(h, params["g1"], params["be1"]))
    h = _conv1d_ref(h, params["w2"], params["b2"], 1, pad)
    h = jax.nn.relu(_bn_train_ref(h, params["g2"], params["be2"]))
    s = _conv1d_ref(x, params["ws"], params["bs"], 2, 0) if proj else x
    return h + s


if __name__ == "__main__":
    key = jax.random.PRNGKey(0)
    k_x, k_p1, k_p2, k_x2 = jax.random.split(key, 4)

    K = 3
    # bf16 MXU operands + train-mode BN normalization vs f32 reference:
    # compare at a few-percent tolerance.
    TOL = dict(rtol=5e-2, atol=5e-2)

    x = jax.random.normal(k_x, (2, 4, 16), jnp.float32)

    # Case 1: in_channels != out_channels -> conv shortcut, stride 2
    params_proj = init_params(k_p1, 4, 8, K)
    out = jax.block_until_ready(residual_cell(x, params_proj, K))
    ref = residual_cell_ref(x, params_proj, K)
    np.testing.assert_allclose(np.asarray(out), np.asarray(ref), **TOL)

    # Case 2: in_channels == out_channels -> identity shortcut, stride 1
    params_id = init_params(k_p2, 4, 4, K)
    out = jax.block_until_ready(residual_cell(x, params_id, K))
    ref = residual_cell_ref(x, params_id, K)
    np.testing.assert_allclose(np.asarray(out), np.asarray(ref), **TOL)

    # Case 3/4: multi-tile grid, 2-chunk partial stats and batch-padding mask
    x6 = jax.random.normal(k_x2, (6, 4, 16), jnp.float32)
    out = jax.block_until_ready(residual_cell(x6, params_proj, K, batch_tile=2))
    ref = residual_cell_ref(x6, params_proj, K)
    np.testing.assert_allclose(np.asarray(out), np.asarray(ref), **TOL)

    out = jax.block_until_ready(residual_cell(x6, params_id, K, batch_tile=2))
    ref = residual_cell_ref(x6, params_id, K)
    np.testing.assert_allclose(np.asarray(out), np.asarray(ref), **TOL)

    print("KERNEL_OK")
</pallas_src>

<mosaic_0001>
module attributes {stable_mosaic.version = 11 : i64} {
  func.func @_conv1_stats_slab_kernel(%arg0: i32, %arg1: i32, %arg2: memref<2x2x9x4xbf16, #tpu.memory_space<vmem>>, %arg3: memref<3x4x8xbf16, #tpu.memory_space<vmem>>, %arg4: memref<2x8x8xbf16, #tpu.memory_space<vmem>>, %arg5: memref<1x1x8xf32, #tpu.memory_space<vmem>>, %arg6: memref<1x1x8xf32, #tpu.memory_space<vmem>>) attributes {dimension_semantics = [#tpu.dimension_semantics<parallel>, #tpu.dimension_semantics<arbitrary>], iteration_bounds = array<i64: 1, 1>, scalar_prefetch = 0 : i64, scratch_operands = 0 : i64, tpu.core_type = #tpu.core_type<tc>, window_params = [{transform_indices = @transform_0, window_bounds = array<i64: 2, 2, 9, 4>}, {pipeline_mode = #tpu.pipeline_mode<synchronous>, transform_indices = @transform_1, window_bounds = array<i64: 3, 4, 8>}, {transform_indices = @transform_2, window_bounds = array<i64: 2, 8, 8>}, {transform_indices = @transform_3, window_bounds = array<i64: 1, 1, 8>}, {transform_indices = @transform_4, window_bounds = array<i64: 1, 1, 8>}]} {
    %c0_i32 = arith.constant 0 : i32
    %0 = arith.cmpi eq, %arg1, %c0_i32 : i32
    %1 = arith.extui %0 : i1 to i32
    %c0_i32_0 = arith.constant 0 : i32
    %2 = arith.cmpi ne, %1, %c0_i32_0 : i32
    scf.if %2 {
      %cst_38 = arith.constant 0.000000e+00 : f32
      %39 = vector.broadcast %cst_38 : f32 to vector<1x1x8xf32>
      %c0_39 = arith.constant 0 : index
      %c0_40 = arith.constant 0 : index
      %c0_41 = arith.constant 0 : index
      %40 = vector.load %arg5[%c0_39, %c0_40, %c0_41] : memref<1x1x8xf32, #tpu.memory_space<vmem>>, vector<1x1x8xf32>
      tpu.vector_store %arg5[%c0_39, %c0_40, %c0_41], %39 {strides = array<i32>} : memref<1x1x8xf32, #tpu.memory_space<vmem>>, vector<1x1x8xf32>,
      %cst_42 = arith.constant 0.000000e+00 : f32
      %41 = vector.broadcast %cst_42 : f32 to vector<1x1x8xf32>
      %c0_43 = arith.constant 0 : index
      %c0_44 = arith.constant 0 : index
      %c0_45 = arith.constant 0 : index
      %42 = vector.load %arg6[%c0_43, %c0_44, %c0_45] : memref<1x1x8xf32, #tpu.memory_space<vmem>>, vector<1x1x8xf32>
      tpu.vector_store %arg6[%c0_43, %c0_44, %c0_45], %41 {strides = array<i32>} : memref<1x1x8xf32, #tpu.memory_space<vmem>>, vector<1x1x8xf32>,
    } else {
    }
    %c0 = arith.constant 0 : index
    %c0_1 = arith.constant 0 : index
    %c0_2 = arith.constant 0 : index
    %c0_3 = arith.constant 0 : index
    %3 = vector.load %arg2[%c0, %c0_1, %c0_2, %c0_3] : memref<2x2x9x4xbf16, #tpu.memory_space<vmem>>, vector<2x1x8x4xbf16>
    %4 = vector.shape_cast %3 : vector<2x1x8x4xbf16> to vector<2x8x4xbf16>
    %5 = vector.shape_cast %4 : vector<2x8x4xbf16> to vector<16x4xbf16>
    %c0_4 = arith.constant 0 : index
    %c0_5 = arith.constant 0 : index
    %c0_6 = arith.constant 0 : index
    %6 = vector.load %arg3[%c0_4, %c0_5, %c0_6] : memref<3x4x8xbf16, #tpu.memory_space<vmem>>, vector<1x4x8xbf16>
    %7 = vector.shape_cast %6 : vector<1x4x8xbf16> to vector<4x8xbf16>
    %cst = arith.constant dense<0.000000e+00> : vector<16x8xf32>
    %8 = tpu.matmul %5, %7, %cst {dimension_numbers = #tpu.dot_dimension_numbers<[1], [0], [0], [1], [0, 0, 1, 1], [], []>} : vector<16x4xbf16>, vector<4x8xbf16>, vector<16x8xf32> -> vector<16x8xf32>
    %c0_7 = arith.constant 0 : index
    %c1 = arith.constant 1 : index
    %c0_8 = arith.constant 0 : index
    %c0_9 = arith.constant 0 : index
    %9 = vector.load %arg2[%c0_7, %c1, %c0_8, %c0_9] : memref<2x2x9x4xbf16, #tpu.memory_space<vmem>>, vector<2x1x8x4xbf16>
    %10 = vector.shape_cast %9 : vector<2x1x8x4xbf16> to vector<2x8x4xbf16>
    %11 = vector.shape_cast %10 : vector<2x8x4xbf16> to vector<16x4xbf16>
    %c1_10 = arith.constant 1 : index
    %c0_11 = arith.constant 0 : index
    %c0_12 = arith.constant 0 : index
    %12 = vector.load %arg3[%c1_10, %c0_11, %c0_12] : memref<3x4x8xbf16, #tpu.memory_space<vmem>>, vector<1x4x8xbf16>
    %13 = vector.shape_cast %12 : vector<1x4x8xbf16> to vector<4x8xbf16>
    %cst_13 = arith.constant dense<0.000000e+00> : vector<16x8xf32>
    %14 = tpu.matmul %11, %13, %cst_13 {dimension_numbers = #tpu.dot_dimension_numbers<[1], [0], [0], [1], [0, 0, 1, 1], [], []>} : vector<16x4xbf16>, vector<4x8xbf16>, vector<16x8xf32> -> vector<16x8xf32>
    %15 = arith.addf %8, %14 : vector<16x8xf32>
    %c0_14 = arith.constant 0 : index
    %c0_15 = arith.constant 0 : index
    %c1_16 = arith.constant 1 : index
    %c0_17 = arith.constant 0 : index
    %16 = vector.load %arg2[%c0_14, %c0_15, %c1_16, %c0_17] : memref<2x2x9x4xbf16, #tpu.memory_space<vmem>>, vector<2x1x8x4xbf16>
    %17 = vector.shape_cast %16 : vector<2x1x8x4xbf16> to vector<2x8x4xbf16>
    %18 = vector.shape_cast %17 : vector<2x8x4xbf16> to vector<16x4xbf16>
    %c2 = arith.constant 2 : index
    %c0_18 = arith.constant 0 : index
    %c0_19 = arith.constant 0 : index
    %19 = vector.load %arg3[%c2, %c0_18, %c0_19] : memref<3x4x8xbf16, #tpu.memory_space<vmem>>, vector<1x4x8xbf16>
    %20 = vector.shape_cast %19 : vector<1x4x8xbf16> to vector<4x8xbf16>
    %cst_20 = arith.constant dense<0.000000e+00> : vector<16x8xf32>
    %21 = tpu.matmul %18, %20, %cst_20 {dimension_numbers = #tpu.dot_dimension_numbers<[1], [0], [0], [1], [0, 0, 1, 1], [], []>} : vector<16x4xbf16>, vector<4x8xbf16>, vector<16x8xf32> -> vector<16x8xf32>
    %22 = arith.addf %15, %21 : vector<16x8xf32>
    %c0_21 = arith.constant 0 : index
    %c0_22 = arith.constant 0 : index
    %c0_23 = arith.constant 0 : index
    %23 = vector.load %arg5[%c0_21, %c0_22, %c0_23] : memref<1x1x8xf32, #tpu.memory_space<vmem>>, vector<1x1x8xf32>
    %cst_24 = arith.constant dense<0.000000e+00> : vector<8xf32>
    %24 = vector.multi_reduction <add>, %22, %cst_24 [0] : vector<16x8xf32> to vector<8xf32>
    %25 = vector.shape_cast %24 : vector<8xf32> to vector<1x8xf32>
    %26 = vector.shape_cast %25 : vector<1x8xf32> to vector<1x1x8xf32>
    %27 = arith.addf %23, %26 : vector<1x1x8xf32>
    %c0_25 = arith.constant 0 : index
    %c0_26 = arith.constant 0 : index
    %c0_27 = arith.constant 0 : index
    %28 = vector.load %arg5[%c0_25, %c0_26, %c0_27] : memref<1x1x8xf32, #tpu.memory_space<vmem>>, vector<1x1x8xf32>
    tpu.vector_store %arg5[%c0_25, %c0_26, %c0_27], %27 {strides = array<i32>} : memref<1x1x8xf32, #tpu.memory_space<vmem>>, vector<1x1x8xf32>,
    %c0_28 = arith.constant 0 : index
    %c0_29 = arith.constant 0 : index
    %c0_30 = arith.constant 0 : index
    %29 = vector.load %arg6[%c0_28, %c0_29, %c0_30] : memref<1x1x8xf32, #tpu.memory_space<vmem>>, vector<1x1x8xf32>
    %30 = arith.mulf %22, %22 : vector<16x8xf32>
    %cst_31 = arith.constant dense<0.000000e+00> : vector<8xf32>
    %31 = vector.multi_reduction <add>, %30, %cst_31 [0] : vector<16x8xf32> to vector<8xf32>
    %32 = vector.shape_cast %31 : vector<8xf32> to vector<1x8xf32>
    %33 = vector.shape_cast %32 : vector<1x8xf32> to vector<1x1x8xf32>
    %34 = arith.addf %29, %33 : vector<1x1x8xf32>
    %c0_32 = arith.constant 0 : index
    %c0_33 = arith.constant 0 : index
    %c0_34 = arith.constant 0 : index
    %35 = vector.load %arg6[%c0_32, %c0_33, %c0_34] : memref<1x1x8xf32, #tpu.memory_space<vmem>>, vector<1x1x8xf32>
    tpu.vector_store %arg6[%c0_32, %c0_33, %c0_34], %34 {strides = array<i32>} : memref<1x1x8xf32, #tpu.memory_space<vmem>>, vector<1x1x8xf32>,
    %36 = vector.shape_cast %22 : vector<16x8xf32> to vector<2x8x8xf32>
    %37 = arith.truncf %36 : vector<2x8x8xf32> to vector<2x8x8xbf16>
    %c0_35 = arith.constant 0 : index
    %c0_36 = arith.constant 0 : index
    %c0_37 = arith.constant 0 : index
    %38 = vector.load %arg4[%c0_35, %c0_36, %c0_37] : memref<2x8x8xbf16, #tpu.memory_space<vmem>>, vector<2x8x8xbf16>
    tpu.vector_store %arg4[%c0_35, %c0_36, %c0_37], %37 {strides = array<i32>} : memref<2x8x8xbf16, #tpu.memory_space<vmem>>, vector<2x8x8xbf16>,
    return
  }
  func.func @transform_0(%arg0: i32, %arg1: i32) -> (i32, i32, i32, i32) {
    %c1_i32 = arith.constant 1 : i32
    %0 = arith.muli %arg0, %c1_i32 : i32
    %1 = arith.addi %0, %arg1 : i32
    %c0_i32 = arith.constant 0 : i32
    %c0_i32_0 = arith.constant 0 : i32
    %c0_i32_1 = arith.constant 0 : i32
    %c0_i32_2 = arith.constant 0 : i32
    return %1, %c0_i32, %c0_i32_0, %c0_i32_1 : i32, i32, i32, i32
  }
  func.func @transform_1(%arg0: i32, %arg1: i32) -> (i32, i32, i32) {
    %c0_i32 = arith.constant 0 : i32
    %c0_i32_0 = arith.constant 0 : i32
    %c0_i32_1 = arith.constant 0 : i32
    %c0_i32_2 = arith.constant 0 : i32
    return %c0_i32, %c0_i32_0, %c0_i32_1 : i32, i32, i32
  }
  func.func @transform_2(%arg0: i32, %arg1: i32) -> (i32, i32, i32) {
    %c1_i32 = arith.constant 1 : i32
    %0 = arith.muli %arg0, %c1_i32 : i32
    %1 = arith.addi %0, %arg1 : i32
    %c0_i32 = arith.constant 0 : i32
    %c0_i32_0 = arith.constant 0 : i32
    %c0_i32_1 = arith.constant 0 : i32
    return %1, %c0_i32, %c0_i32_0 : i32, i32, i32
  }
  func.func @transform_3(%arg0: i32, %arg1: i32) -> (i32, i32, i32) {
    %c0_i32 = arith.constant 0 : i32
    %c0_i32_0 = arith.constant 0 : i32
    %c0_i32_1 = arith.constant 0 : i32
    return %arg0, %c0_i32, %c0_i32_0 : i32, i32, i32
  }
  func.func @transform_4(%arg0: i32, %arg1: i32) -> (i32, i32, i32) {
    %c0_i32 = arith.constant 0 : i32
    %c0_i32_0 = arith.constant 0 : i32
    %c0_i32_1 = arith.constant 0 : i32
    return %arg0, %c0_i32, %c0_i32_0 : i32, i32, i32
  }
}

</mosaic_0001>

<bundles_post_ra>
// kernel: tpu_custom_call.1
= control target key start
LH: loop header
LB: loop body
LE: loop exit
PB: predicated region body
PF: predicated region fallthrough
CT: control target
= control target key end

     0   :  { %10 = vsyncpa [#allocation3], 0  ;;  %vm68_vm0 = vcmask 1041408   ;;  %v447_v2 = vmov 0.0   ;;  %vm64_vm1 = vcmask 31744   ;;  %vm448_vm2 = vmmov 0   ;;  %s527_s0 = inlined_call_operand.vmem [shape: bf16[2,2,9,4], index: 0, kind: input, shape index: {}]   ;;  %s528_s1 = inlined_call_operand.vmem [shape: bf16[3,4,8], index: 1, kind: input, shape index: {}]   ;;  %s529_s2 = inlined_call_operand.hbm [shape: bf16[2,8,8], index: 2, kind: output, shape index: {0}]   ;;  %s530_s3 = inlined_call_operand.hbm [shape: f32[1,1,8], index: 3, kind: output, shape index: {1}]   ;;  %s531_s4 = inlined_call_operand.hbm [shape: f32[1,1,8], index: 4, kind: output, shape index: {2}]  }
   0x1   :  { %v342_v0 = vld [vmem:[%s528_s1 + $0x2] sm:$0x3]  ;;  %v53_v1 = vld [vmem:[%s528_s1] sm:$0x3]  ;;  %356 = vmatprep.subr.bf16.mxu0 %v447_v2  ;;  %362 = vmatprep.subr.bf16.mxu1 %v447_v2  ;;  %v381_v5 = vld [vmem:[%s527_s0 + $0x8] ss:$16 sps:$4 sm:$0xff]  }
   0x2   :  { %v70_v3 = vsel %vm68_vm0, %v342_v0, 0  ;;  %v122_v4 = vsel %vm68_vm0, %v53_v1, 0  ;;  %358 = vmatprep.mubr.msk.bf16.mxu0 %vm448_vm2, %v447_v2  ;;  %364 = vmatprep.mubr.msk.bf16.mxu1 %vm448_vm2, %v447_v2  ;;  %v382_v6 = vld [vmem:[%s527_s0] ss:$16 sps:$4 sm:$0xff]   ;;  %v347_v7 = vld [vmem:[%s528_s1 + $0x4] sm:$0x3] }
   0x3   :  { %357 = vmatpush3.bf16.msra.mxu0 %v70_v3  ;;  %363 = vmatpush3.bf16.msra.mxu1 %v122_v4  ;;  %v209_v8 = vsel %vm68_vm0, %v347_v7, 0  ;;  %v165_v9 = vld [vmem:[%s527_s0] sm:$0xf]  ;;  %v166_v10 = vld [vmem:[%s527_s0 + $0x4] sm:$0x1] }
   0x4   :  { %368 = vmatprep.subr.bf16.mxu0 %v447_v2  ;;  %v167_v11 = vld [vmem:[%s527_s0 + $0x10] sm:$0xf]  ;;  %v168_v12 = vld [vmem:[%s527_s0 + $0x14] sm:$0x1]  ;;  %v173_v13 = vshrl.u32 %v165_v9, 16  ;;  %v176_v14 = vshll.u32 %v165_v9, 16 }
   0x5   :  { %v182_v15 = vshll.u32 %v166_v10, 16  ;;  %vm169_vm3 = vsmask.f32 3328  ;;  %v187_v16 = vshrl.u32 %v167_v11, 16  ;;  %v190_v17 = vshll.u32 %v167_v11, 16 }
   0x6   :  { %359 = vmatmul.mubr.msk.bf16.vlgmr.msra.gmra.mxu0 %vm64_vm1, %v381_v5  ;;  %365 = vmatmul.mubr.msk.bf16.vlgmr.msra.gmra.mxu1 %vm64_vm1, %v382_v6  ;;  %v196_v18 = vshll.u32 %v168_v12, 16  ;;  %vm170_vm4 = vsmask.f32 7440  ;;  %v175_v19 = vrot.slane %v173_v13, 4  ;;  %v178_v20 = vrot.slane %v176_v14, 5 }
   0x7   :  { %369 = vmatpush3.bf16.msra.mxu0 %v209_v8  ;;  %370 = vmatprep.mubr.msk.bf16.mxu0 %vm448_vm2, %v447_v2 }
   0x8   :  { %11 = vsyncpa [#allocation5], 0  ;;  %v189_v21 = vrot.slane %v187_v16, 4  ;;  %v192_v22 = vrot.slane %v190_v17, 5  ;;  %v179_v23 = vor.u32 %v178_v20, %v175_v19  ;;  %v184_v24 = vrot.slane %v182_v15, 5  ;;  %s449_s0 = smov [#allocation2]  }
   0x9   :  { %vm171_vm5 = vmor %vm169_vm3, %vm170_vm4  ;;  %v198_v26 = vrot.slane %v196_v18, 5  ;;  %vm48_vm6 = vcmask 57344   ;;  %vm284_vm7 = vcmask 60416   ;;  %s296_s6 = sshll.u32 %s449_s0, 4  ;;  %vm255_vm8 = vcmask 64512   ;;  %s297_s6 = int_to_ptr.vmem [resolvable:$true] %s296_s6 }
   0xa   :  { %v193_v25 = vor.u32 %v192_v22, %v189_v21  ;;  %v180_v27 = vrot.slane %v179_v23, 4  ;;  %49 = vst.msk [vmem:[#allocation4] sm:$0x1] %vm48_vm6, %v447_v2  ;;  %50 = vst.msk [vmem:[#allocation6] sm:$0x1] %vm48_vm6, %v447_v2  ;;  %s383_s7 = scalar_lea.vmem %s297_s6, 128  ;;  %p388_p1 = scmp.lt.s32.totalorder %s297_s6, %s297_s6 }
   0xb   :  { %p384_p0 = scmp.ne.s32.totalorder %s297_s6, %s383_s7  ;;  %p389_p2 = scmp.lt.s32.totalorder %s383_s7, %s383_s7 }
   0xc   :  { %v194_v28 = vrot.slane %v193_v25, 4  ;;  %v185_v29 = vsel %vm171_vm5, %v180_v27, %v184_v24 }
   0xd   :  { %p390_p3 = por %p389_p2, %p388_p1 }
   0xe   :  { %v199_v30 = vsel %vm171_vm5, %v194_v28, %v198_v26 }
   0xf   :  { %v348_v31 = vcombine.low %v185_v29, %v199_v30  ;;  %p391_p4 = pnand %p390_p3, %p384_p0 }
  0x11   :  { %371 = vmatmul.mubr.msk.bf16.vlgmr.msra.gmra.mxu0 %vm64_vm1, %v348_v31 }
  0xc6   :  { %v106_v32 = vpop.f32.mrf.mxu0  ;;  %v158_v33 = vpop.f32.mrf.mxu1 }
  0xc7   :  { %v159_v40 = vadd.f32 %v158_v33, %v106_v32 }
  0xc8   :  { %v360_v34 = vpop.f32.mrf.mxu0  ;;  %v366_v35 = vpop.f32.mrf.mxu1 }
  0xca   :  { %v109_v36 = vpop.f32.mrf.mxu0  ;;  %v161_v37 = vpop.f32.mrf.mxu1 }
  0xcb   :  { %v162_v44 = vadd.f32 %v161_v37, %v109_v36 }
  0xcc   :  { %v361_v38 = vpop.f32.mrf.mxu0  ;;  %v367_v39 = vpop.f32.mrf.mxu1 }
  0xd1   :  { %v245_v41 = vpop.f32.mrf.mxu0 }
  0xd2   :  { %v252_v42 = vadd.f32 %v245_v41, %v159_v40 }
  0xd3   :  { %v372_v43 = vpop.f32.mrf.mxu0 }
  0xd4   :  { %v282_v45 = vpack.c.bf16 %v252_v42, %v252_v42  ;;  %v269_v47 = vmul.f32 %v252_v42, %v252_v42  ;;  %v256_v50 = vsel %vm255_vm8, %v252_v42, 0.0 }
  0xd5   :  { %v248_v46 = vpop.f32.mrf.mxu0 }
  0xd6   :  { %v253_v48 = vadd.f32 %v248_v46, %v162_v44  ;;  %285 = vst.msk [vmem:[#allocation2] sm:$0xf] %vm284_vm7, %v282_v45  ;;  %v271_v55 = vsel %vm255_vm8, %v269_v47, 0.0 }
  0xd7   :  { %v373_v49 = vpop.f32.mrf.mxu0 }
  0xd8   :  { %v257_v51 = vsel %vm255_vm8, %v253_v48, 0.0  ;;  %v270_v52 = vmul.f32 %v253_v48, %v253_v48  ;;  %v283_v53 = vpack.c.bf16 %v253_v48, %v253_v48 }
  0xd9   :  { %v258_v54 = vadd.f32 %v257_v51, %v256_v50 }
  0xda   :  { %v272_v56 = vsel %vm255_vm8, %v270_v52, 0.0  ;;  %286 = vst.msk [vmem:[#allocation2 + $0x4] sm:$0xf] %vm284_vm7, %v283_v53 }
  0xdb   :  { %v259_v57 = vrot.slane %v258_v54, 4  ;;  %v273_v58 = vadd.f32 %v272_v56, %v271_v55 }
  0xdc   :  { %394 = shalt.err (!%p391_p4)
}
  0xdd   :  { %s450_s8 = smov 64   ;;  %s451_s9 = smov 4   ;;  %v260_v59 = vadd.f32 %v259_v57, %v258_v54  ;;  %v274_v60 = vrot.slane %v273_v58, 4  ;;  %v254_v3 = vld [vmem:[#allocation4] sm:$0x1] }
  0xde   :  { %302 = dma.vmem_to_hbm [thread:$0]  %s297_s6, 128, %s529_s2, [#allocation3], %s450_s8, %s450_s8, %s451_s9   ;;  %v268_v6 = vld [vmem:[#allocation6] sm:$0x1] }
  0xdf   :  { %v261_v61 = vrot.slane %v260_v59, 2  ;;  %v275_v62 = vadd.f32 %v274_v60, %v273_v58  ;;  %s452_s12 = smov [#allocation4]   ;;  %s453_s14 = smov [#allocation6]  }
  0xe0   :  { %s309_s13 = sshll.u32 %s452_s12, 4  ;;  %s319_s15 = sshll.u32 %s453_s14, 4  ;;  %s310_s13 = int_to_ptr.vmem [resolvable:$true] %s309_s13  ;;  %s320_s15 = int_to_ptr.vmem [resolvable:$true] %s319_s15 }
  0xe1   :  { %v262_v63 = vadd.f32 %v261_v61, %v260_v59  ;;  %v276_v0 = vrot.slane %v275_v62, 2  ;;  %s403_s2 = scalar_lea.vmem %s310_s13, 16  ;;  %s407_s16 = scalar_lea.vmem %s310_s13, 32 }
  0xe2   :  { %p404_p5 = scmp.ne.s32.totalorder %s310_s13, %s403_s2  ;;  %p408_p6 = scmp.lt.s32.totalorder %s310_s13, %s310_s13 }
  0xe3   :  { %v263_v1 = vrot.slane %v262_v63, 1  ;;  %v277_v2 = vadd.f32 %v276_v0, %v275_v62  ;;  %p409_p7 = scmp.lt.s32.totalorder %s407_s16, %s403_s2 }
  0xe5   :  { %v264_v4 = vadd.f32 %v263_v1, %v262_v63  ;;  %v278_v5 = vrot.slane %v277_v2, 1  ;;  %p410_p8 = por %p409_p7, %p408_p6 }
  0xe7   :  { %v265_v7 = vadd.f32 %v264_v4, %v254_v3  ;;  %v279_v8 = vadd.f32 %v278_v5, %v277_v2  ;;  %p411_p9 = pnand %p410_p8, %p404_p5 }
  0xe9   :  { %267 = vst.msk [vmem:[#allocation4] sm:$0x1] %vm48_vm6, %v265_v7  ;;  %v280_v9 = vadd.f32 %v279_v8, %v268_v6 }
  0xea   :  { %414 = shalt.err (!%p411_p9)
}
  0xeb   :  { %312 = dma.vmem_to_hbm [thread:$0]  %s310_s13, 16, %s530_s3, [#allocation5]   ;;  %281 = vst.msk [vmem:[#allocation6] sm:$0x1] %vm48_vm6, %v280_v9 }
  0xec   :  { %s423_s19 = scalar_lea.vmem %s320_s15, 16  ;;  %s427_s20 = scalar_lea.vmem %s320_s15, 32 }
  0xed   :  { %p424_p10 = scmp.ne.s32.totalorder %s320_s15, %s423_s19  ;;  %p428_p11 = scmp.lt.s32.totalorder %s320_s15, %s320_s15 }
  0xee   :  { %p429_p12 = scmp.lt.s32.totalorder %s427_s20, %s423_s19 }
  0xf0   :  { %p430_p13 = por %p429_p12, %p428_p11 }
  0xf2   :  { %p431_p0 = pnand %p430_p13, %p424_p10 }
  0xf4   :  { %434 = shalt.err (!%p431_p0)
}
  0xf5   :  { %322 = dma.vmem_to_hbm [thread:$0]  %s320_s15, 16, %s531_s4, [#allocation5]  }
  0xf6   :  { %443 = dma.done.wait [#allocation3], 128  }
  0xf7   :  { %444 = vsyncadd [#allocation3], 4294967168 }
  0xf8   :  { %445 = dma.done.wait [#allocation5], 32  }
  0xf9   :  { %446 = vsyncadd [#allocation5], 4294967264 }
  0xfa   :  { %332 = vsyncpa [#allocation3], 1 }
  0xfb   :  { %333 = vsyncpa [#allocation5], 1 }

</bundles_post_ra>
